<compile_context>
chip_gen: v5e
topology: v5e:2x2
jax: 0.10.0
libtpu: 0.0.40
codegen_flags: <defaults>
</compile_context>

<pallas_src>
import jax
import jax.numpy as jnp
from jax import lax
from jax.experimental import pallas as pl
from jax.experimental.pallas import tpu as pltpu
import numpy as np

# ---- "constant" module values (synthetic, small) ----------------------------
HIDDEN_SIZE = 32     # constant.hidden_size
STATE_NUM = 3        # constant.state_num  ->  state_num - 1 = 2 streams


# ---- Pallas LSTM kernel ------------------------------------------------------
def session_lstm_kernel(tm_ref, x_ref, wih_ref, whh_ref, b_ref, out_ref, gx_sc):
    # tm_ref : VMEM (Bp*T, 1) int32  time-major gather indices (row j = t*Bp + s)
    # x_ref  : VMEM (R, H)           flattened, un-permuted input rows
    # wih_ref: VMEM (H, 4H)          W_ih^T
    # whh_ref: VMEM (H, 4H)          W_hh^T
    # b_ref  : VMEM (1, 4H)          b_ih + b_hh
    # out_ref: VMEM (Bp, T*H)        lane-dense output (time blocks along lanes)
    # gx_sc  : VMEM (Bp*T, 4H)       hoisted input projection (+bias), time-major
    R, H = x_ref.shape
    BT = tm_ref.shape[0]
    Bp, TH = out_ref.shape
    T = TH // H

    # ---- 1. vectorized gather: one-hot compare + one MXU matmul -------------
    idx = tm_ref[...]                                          # (BT, 1) int32
    cols = lax.broadcasted_iota(jnp.int32, (BT, R), 1)         # column ids
    onehot = (cols == idx).astype(jnp.float32)                 # (BT, R)
    xg = jnp.dot(onehot, x_ref[...],
                 preferred_element_type=jnp.float32)           # (BT, H), time-major

    # ---- 2. hoisted input projection for ALL T steps (bias added once) ------
    gx_sc[...] = jnp.dot(xg, wih_ref[...],
                         preferred_element_type=jnp.float32) + b_ref[...]

    # ---- 3. serial recurrence: h/c carried in vregs, fully unrolled ---------
    whh = whh_ref[...]
    h = jnp.zeros((Bp, H), jnp.float32)
    c = jnp.zeros((Bp, H), jnp.float32)
    outs = []
    for t in range(T):                                         # static unroll
        gates = gx_sc[pl.ds(t * Bp, Bp), :] + jnp.dot(
            h, whh, preferred_element_type=jnp.float32)        # (Bp, 4H)
        sig = jax.nn.sigmoid(gates)                            # full-width EUP pass
        th = jnp.tanh(gates)                                   # full-width EUP pass
        i_g = sig[:, 0 * H:1 * H]
        f_g = sig[:, 1 * H:2 * H]
        g_g = th[:, 2 * H:3 * H]
        o_g = sig[:, 3 * H:4 * H]
        c = f_g * c + i_g * g_g
        h = o_g * jnp.tanh(c)
        outs.append(h)

    # single lane-dense store (no per-step masked 32-lane vst)
    out_ref[...] = jnp.concatenate(outs, axis=1).astype(out_ref.dtype)


def session_lstm_pallas(tm_col, x_flat, wih_t, whh_t, b, Bp, T):
    H = x_flat.shape[1]
    return pl.pallas_call(
        session_lstm_kernel,
        out_shape=jax.ShapeDtypeStruct((Bp, T * H), jnp.float32),
        in_specs=[pl.BlockSpec(memory_space=pltpu.MemorySpace.VMEM)] * 5,
        out_specs=pl.BlockSpec(memory_space=pltpu.MemorySpace.VMEM),
        scratch_shapes=[pltpu.VMEM((Bp * T, 4 * H), jnp.float32)],
    )(tm_col, x_flat, wih_t, whh_t, b)


# ---- SessionEncoder forward (wrapper is reshape-only) ------------------------
def session_encoder_forward(input_var, transpose_matrix, wih, whh, bih, bhh):
    batch, max_conv, H = input_var.shape
    assert H == HIDDEN_SIZE
    assert max_conv % (STATE_NUM - 1) == 0
    T = max_conv // (STATE_NUM - 1)
    Bp = batch * (STATE_NUM - 1)
    R = batch * max_conv

    x_flat = input_var.reshape(R, H).astype(jnp.float32)
    # permute gather indices to time-major: row (t*Bp + s) <- transpose_matrix[s*T + t]
    tm_col = (transpose_matrix.astype(jnp.int32)
              .reshape(Bp, T).T.reshape(R, 1))
    wih_t = jnp.transpose(wih).astype(jnp.float32)             # (H, 4H)
    whh_t = jnp.transpose(whh).astype(jnp.float32)             # (H, 4H)
    b = (bih + bhh).reshape(1, 4 * H).astype(jnp.float32)

    out = session_lstm_pallas(tm_col, x_flat, wih_t, whh_t, b, Bp, T)  # (Bp, T*H)
    # TODO(synk): bidirectional branch (reverse pass + Linear+ReLU projection) and
    # the rnn_cell='gru' variant are config-disabled by default and not implemented.
    return out.reshape(Bp, T, H).reshape(batch, STATE_NUM - 1, T, H)


# ---- Pure-JAX reference (mirrors torch.nn.LSTM math) -------------------------
def lstm_ref(x, wih, whh, bih, bhh):
    B, T, H = x.shape

    def step(carry, x_t):
        h, c = carry
        gates = x_t @ wih.T + bih + h @ whh.T + bhh
        i_g = jax.nn.sigmoid(gates[:, 0 * H:1 * H])
        f_g = jax.nn.sigmoid(gates[:, 1 * H:2 * H])
        g_g = jnp.tanh(gates[:, 2 * H:3 * H])
        o_g = jax.nn.sigmoid(gates[:, 3 * H:4 * H])
        c = f_g * c + i_g * g_g
        h = o_g * jnp.tanh(c)
        return (h, c), h

    init = (jnp.zeros((B, H), jnp.float32), jnp.zeros((B, H), jnp.float32))
    _, ys = lax.scan(step, init, jnp.transpose(x, (1, 0, 2)))
    return jnp.transpose(ys, (1, 0, 2))


def session_encoder_ref(input_var, transpose_matrix, wih, whh, bih, bhh):
    batch, max_conv, H = input_var.shape
    T = max_conv // (STATE_NUM - 1)
    flat = input_var.reshape(-1, H)[transpose_matrix]
    x = flat.reshape(-1, T, H)
    out = lstm_ref(x, wih, whh, bih, bhh)
    return out.reshape(batch, STATE_NUM - 1, T, H)


if __name__ == "__main__":
    key = jax.random.PRNGKey(0)
    batch, max_conv, H = 2, 8, HIDDEN_SIZE

    k_x, k_p, k_wih, k_whh, k_bih, k_bhh = jax.random.split(key, 6)
    input_var = jax.random.normal(k_x, (batch, max_conv, H), dtype=jnp.float32)
    transpose_matrix = jax.random.permutation(k_p, batch * max_conv).astype(jnp.int32)

    # Deterministic LSTM params, PyTorch-style uniform(-1/sqrt(H), 1/sqrt(H))
    bound = 1.0 / np.sqrt(H)
    wih = jax.random.uniform(k_wih, (4 * H, H), jnp.float32, -bound, bound)
    whh = jax.random.uniform(k_whh, (4 * H, H), jnp.float32, -bound, bound)
    bih = jax.random.uniform(k_bih, (4 * H,), jnp.float32, -bound, bound)
    bhh = jax.random.uniform(k_bhh, (4 * H,), jnp.float32, -bound, bound)

    out = session_encoder_forward(input_var, transpose_matrix, wih, whh, bih, bhh)
    out = jax.block_until_ready(out)

    ref = session_encoder_ref(input_var, transpose_matrix, wih, whh, bih, bhh)
    np.testing.assert_allclose(np.asarray(out), np.asarray(ref), rtol=1e-5, atol=1e-5)
    assert out.shape == (batch, STATE_NUM - 1, max_conv // (STATE_NUM - 1), H)

    print("KERNEL_OK")
</pallas_src>

<mosaic_0001>
module attributes {stable_mosaic.version = 11 : i64} {
  func.func @session_lstm_kernel(%arg0: memref<16x1xi32, #tpu.memory_space<vmem>>, %arg1: memref<16x32xf32, #tpu.memory_space<vmem>>, %arg2: memref<32x128xf32, #tpu.memory_space<vmem>>, %arg3: memref<32x128xf32, #tpu.memory_space<vmem>>, %arg4: memref<1x128xf32, #tpu.memory_space<vmem>>, %arg5: memref<4x128xf32, #tpu.memory_space<vmem>>, %arg6: memref<16x128xf32, #tpu.memory_space<vmem>>) attributes {dimension_semantics = [], scalar_prefetch = 0 : i64, scratch_operands = 1 : i64, tpu.core_type = #tpu.core_type<tc>} {
    %c0 = arith.constant 0 : index
    %c0_0 = arith.constant 0 : index
    %0 = vector.load %arg0[%c0, %c0_0] : memref<16x1xi32, #tpu.memory_space<vmem>>, vector<16x1xi32>
    %1 = tpu.iota {dimensions = array<i32: 1>} : vector<16x16xi32>
    %2 = vector.broadcast %0 : vector<16x1xi32> to vector<16x16xi32>
    %3 = arith.cmpi eq, %1, %2 : vector<16x16xi32>
    %4 = arith.extui %3 : vector<16x16xi1> to vector<16x16xi32>
    %5 = arith.sitofp %4 : vector<16x16xi32> to vector<16x16xf32>
    %c0_1 = arith.constant 0 : index
    %c0_2 = arith.constant 0 : index
    %6 = vector.load %arg1[%c0_1, %c0_2] : memref<16x32xf32, #tpu.memory_space<vmem>>, vector<16x32xf32>
    %cst = arith.constant dense<0.000000e+00> : vector<16x32xf32>
    %7 = tpu.matmul %5, %6, %cst {dimension_numbers = #tpu.dot_dimension_numbers<[1], [0], [0], [1], [0, 0, 1, 1], [], []>} : vector<16x16xf32>, vector<16x32xf32>, vector<16x32xf32> -> vector<16x32xf32>
    %c0_3 = arith.constant 0 : index
    %c0_4 = arith.constant 0 : index
    %8 = vector.load %arg2[%c0_3, %c0_4] : memref<32x128xf32, #tpu.memory_space<vmem>>, vector<32x128xf32>
    %cst_5 = arith.constant dense<0.000000e+00> : vector<16x128xf32>
    %9 = tpu.matmul %7, %8, %cst_5 {dimension_numbers = #tpu.dot_dimension_numbers<[1], [0], [0], [1], [0, 0, 1, 1], [], []>} : vector<16x32xf32>, vector<32x128xf32>, vector<16x128xf32> -> vector<16x128xf32>
    %c0_6 = arith.constant 0 : index
    %c0_7 = arith.constant 0 : index
    %10 = vector.load %arg4[%c0_6, %c0_7] : memref<1x128xf32, #tpu.memory_space<vmem>>, vector<1x128xf32>
    %11 = vector.broadcast %10 : vector<1x128xf32> to vector<16x128xf32>
    %12 = arith.addf %9, %11 : vector<16x128xf32>
    %c0_8 = arith.constant 0 : index
    %c0_9 = arith.constant 0 : index
    %13 = vector.load %arg6[%c0_8, %c0_9] : memref<16x128xf32, #tpu.memory_space<vmem>>, vector<16x128xf32>
    tpu.vector_store %arg6[%c0_8, %c0_9], %12 {strides = array<i32>} : memref<16x128xf32, #tpu.memory_space<vmem>>, vector<16x128xf32>,
    %c0_10 = arith.constant 0 : index
    %c0_11 = arith.constant 0 : index
    %14 = vector.load %arg3[%c0_10, %c0_11] : memref<32x128xf32, #tpu.memory_space<vmem>>, vector<32x128xf32>
    %cst_12 = arith.constant 0.000000e+00 : f32
    %15 = vector.broadcast %cst_12 : f32 to vector<4x32xf32>
    %cst_13 = arith.constant 0.000000e+00 : f32
    %16 = vector.broadcast %cst_13 : f32 to vector<4x32xf32>
    %c0_14 = arith.constant 0 : index
    %c0_15 = arith.constant 0 : index
    %17 = vector.load %arg6[%c0_14, %c0_15] : memref<16x128xf32, #tpu.memory_space<vmem>>, vector<4x128xf32>
    %cst_16 = arith.constant dense<0.000000e+00> : vector<4x128xf32>
    %18 = tpu.matmul %15, %14, %cst_16 {dimension_numbers = #tpu.dot_dimension_numbers<[1], [0], [0], [1], [0, 0, 1, 1], [], []>} : vector<4x32xf32>, vector<32x128xf32>, vector<4x128xf32> -> vector<4x128xf32>
    %19 = arith.addf %17, %18 : vector<4x128xf32>
    %20 = arith.negf %19 : vector<4x128xf32>
    %21 = math.exp %20 : vector<4x128xf32>
    %cst_17 = arith.constant 1.000000e+00 : f32
    %22 = vector.broadcast %cst_17 : f32 to vector<4x128xf32>
    %23 = arith.addf %22, %21 : vector<4x128xf32>
    %24 = arith.divf %22, %23 : vector<4x128xf32>
    %25 = math.tanh %19 : vector<4x128xf32>
    %26 = vector.extract_strided_slice %24 {offsets = [0, 0], sizes = [4, 32], strides = [1, 1]} : vector<4x128xf32> to vector<4x32xf32>
    %27 = vector.extract_strided_slice %24 {offsets = [0, 32], sizes = [4, 32], strides = [1, 1]} : vector<4x128xf32> to vector<4x32xf32>
    %28 = vector.extract_strided_slice %25 {offsets = [0, 64], sizes = [4, 32], strides = [1, 1]} : vector<4x128xf32> to vector<4x32xf32>
    %29 = vector.extract_strided_slice %24 {offsets = [0, 96], sizes = [4, 32], strides = [1, 1]} : vector<4x128xf32> to vector<4x32xf32>
    %30 = arith.mulf %27, %16 : vector<4x32xf32>
    %31 = arith.mulf %26, %28 : vector<4x32xf32>
    %32 = arith.addf %30, %31 : vector<4x32xf32>
    %33 = math.tanh %32 : vector<4x32xf32>
    %34 = arith.mulf %29, %33 : vector<4x32xf32>
    %c4 = arith.constant 4 : index
    %c0_18 = arith.constant 0 : index
    %35 = vector.load %arg6[%c4, %c0_18] : memref<16x128xf32, #tpu.memory_space<vmem>>, vector<4x128xf32>
    %cst_19 = arith.constant dense<0.000000e+00> : vector<4x128xf32>
    %36 = tpu.matmul %34, %14, %cst_19 {dimension_numbers = #tpu.dot_dimension_numbers<[1], [0], [0], [1], [0, 0, 1, 1], [], []>} : vector<4x32xf32>, vector<32x128xf32>, vector<4x128xf32> -> vector<4x128xf32>
    %37 = arith.addf %35, %36 : vector<4x128xf32>
    %38 = arith.negf %37 : vector<4x128xf32>
    %39 = math.exp %38 : vector<4x128xf32>
    %cst_20 = arith.constant 1.000000e+00 : f32
    %40 = vector.broadcast %cst_20 : f32 to vector<4x128xf32>
    %41 = arith.addf %40, %39 : vector<4x128xf32>
    %42 = arith.divf %40, %41 : vector<4x128xf32>
    %43 = math.tanh %37 : vector<4x128xf32>
    %44 = vector.extract_strided_slice %42 {offsets = [0, 0], sizes = [4, 32], strides = [1, 1]} : vector<4x128xf32> to vector<4x32xf32>
    %45 = vector.extract_strided_slice %42 {offsets = [0, 32], sizes = [4, 32], strides = [1, 1]} : vector<4x128xf32> to vector<4x32xf32>
    %46 = vector.extract_strided_slice %43 {offsets = [0, 64], sizes = [4, 32], strides = [1, 1]} : vector<4x128xf32> to vector<4x32xf32>
    %47 = vector.extract_strided_slice %42 {offsets = [0, 96], sizes = [4, 32], strides = [1, 1]} : vector<4x128xf32> to vector<4x32xf32>
    %48 = arith.mulf %45, %32 : vector<4x32xf32>
    %49 = arith.mulf %44, %46 : vector<4x32xf32>
    %50 = arith.addf %48, %49 : vector<4x32xf32>
    %51 = math.tanh %50 : vector<4x32xf32>
    %52 = arith.mulf %47, %51 : vector<4x32xf32>
    %c8 = arith.constant 8 : index
    %c0_21 = arith.constant 0 : index
    %53 = vector.load %arg6[%c8, %c0_21] : memref<16x128xf32, #tpu.memory_space<vmem>>, vector<4x128xf32>
    %cst_22 = arith.constant dense<0.000000e+00> : vector<4x128xf32>
    %54 = tpu.matmul %52, %14, %cst_22 {dimension_numbers = #tpu.dot_dimension_numbers<[1], [0], [0], [1], [0, 0, 1, 1], [], []>} : vector<4x32xf32>, vector<32x128xf32>, vector<4x128xf32> -> vector<4x128xf32>
    %55 = arith.addf %53, %54 : vector<4x128xf32>
    %56 = arith.negf %55 : vector<4x128xf32>
    %57 = math.exp %56 : vector<4x128xf32>
    %cst_23 = arith.constant 1.000000e+00 : f32
    %58 = vector.broadcast %cst_23 : f32 to vector<4x128xf32>
    %59 = arith.addf %58, %57 : vector<4x128xf32>
    %60 = arith.divf %58, %59 : vector<4x128xf32>
    %61 = math.tanh %55 : vector<4x128xf32>
    %62 = vector.extract_strided_slice %60 {offsets = [0, 0], sizes = [4, 32], strides = [1, 1]} : vector<4x128xf32> to vector<4x32xf32>
    %63 = vector.extract_strided_slice %60 {offsets = [0, 32], sizes = [4, 32], strides = [1, 1]} : vector<4x128xf32> to vector<4x32xf32>
    %64 = vector.extract_strided_slice %61 {offsets = [0, 64], sizes = [4, 32], strides = [1, 1]} : vector<4x128xf32> to vector<4x32xf32>
    %65 = vector.extract_strided_slice %60 {offsets = [0, 96], sizes = [4, 32], strides = [1, 1]} : vector<4x128xf32> to vector<4x32xf32>
    %66 = arith.mulf %63, %50 : vector<4x32xf32>
    %67 = arith.mulf %62, %64 : vector<4x32xf32>
    %68 = arith.addf %66, %67 : vector<4x32xf32>
    %69 = math.tanh %68 : vector<4x32xf32>
    %70 = arith.mulf %65, %69 : vector<4x32xf32>
    %c12 = arith.constant 12 : index
    %c0_24 = arith.constant 0 : index
    %71 = vector.load %arg6[%c12, %c0_24] : memref<16x128xf32, #tpu.memory_space<vmem>>, vector<4x128xf32>
    %cst_25 = arith.constant dense<0.000000e+00> : vector<4x128xf32>
    %72 = tpu.matmul %70, %14, %cst_25 {dimension_numbers = #tpu.dot_dimension_numbers<[1], [0], [0], [1], [0, 0, 1, 1], [], []>} : vector<4x32xf32>, vector<32x128xf32>, vector<4x128xf32> -> vector<4x128xf32>
    %73 = arith.addf %71, %72 : vector<4x128xf32>
    %74 = arith.negf %73 : vector<4x128xf32>
    %75 = math.exp %74 : vector<4x128xf32>
    %cst_26 = arith.constant 1.000000e+00 : f32
    %76 = vector.broadcast %cst_26 : f32 to vector<4x128xf32>
    %77 = arith.addf %76, %75 : vector<4x128xf32>
    %78 = arith.divf %76, %77 : vector<4x128xf32>
    %79 = math.tanh %73 : vector<4x128xf32>
    %80 = vector.extract_strided_slice %78 {offsets = [0, 0], sizes = [4, 32], strides = [1, 1]} : vector<4x128xf32> to vector<4x32xf32>
    %81 = vector.extract_strided_slice %78 {offsets = [0, 32], sizes = [4, 32], strides = [1, 1]} : vector<4x128xf32> to vector<4x32xf32>
    %82 = vector.extract_strided_slice %79 {offsets = [0, 64], sizes = [4, 32], strides = [1, 1]} : vector<4x128xf32> to vector<4x32xf32>
    %83 = vector.extract_strided_slice %78 {offsets = [0, 96], sizes = [4, 32], strides = [1, 1]} : vector<4x128xf32> to vector<4x32xf32>
    %84 = arith.mulf %81, %68 : vector<4x32xf32>
    %85 = arith.mulf %80, %82 : vector<4x32xf32>
    %86 = arith.addf %84, %85 : vector<4x32xf32>
    %87 = math.tanh %86 : vector<4x32xf32>
    %88 = arith.mulf %83, %87 : vector<4x32xf32>
    %89 = tpu.concatenate %34, %52, %70, %88 in 1 : vector<4x32xf32>, vector<4x32xf32>, vector<4x32xf32>, vector<4x32xf32> -> vector<4x128xf32>
    %c0_27 = arith.constant 0 : index
    %c0_28 = arith.constant 0 : index
    %90 = vector.load %arg5[%c0_27, %c0_28] : memref<4x128xf32, #tpu.memory_space<vmem>>, vector<4x128xf32>
    tpu.vector_store %arg5[%c0_27, %c0_28], %89 {strides = array<i32>} : memref<4x128xf32, #tpu.memory_space<vmem>>, vector<4x128xf32>,
    return
  }
}

</mosaic_0001>

<bundles_post_ra>
// kernel: tpu_custom_call.1
= control target key start
LH: loop header
LB: loop body
LE: loop exit
PB: predicated region body
PF: predicated region fallthrough
CT: control target
= control target key end

     0   :  { %10 = vsyncpa [#allocation4], 0  ;;  %s669_s0 = inlined_call_operand.vmem [shape: s32[16,1], index: 0, kind: input, shape index: {}]   ;;  %s670_s1 = inlined_call_operand.vmem [shape: f32[16,32], index: 1, kind: input, shape index: {}]   ;;  %s671_s2 = inlined_call_operand.hbm [shape: f32[32,128], index: 2, kind: input, shape index: {}]   ;;  %s672_s3 = inlined_call_operand.hbm [shape: f32[32,128], index: 3, kind: input, shape index: {}]   ;;  %s673_s4 = inlined_call_operand.vmem [shape: f32[1,128], index: 4, kind: input, shape index: {}]   ;;  %s674_s5 = inlined_call_operand.hbm [shape: f32[4,128], index: 5, kind: output, shape index: {}]  }
   0x1   :  { %11 = vsyncpa [#allocation7], 0 }
   0x2   :  { %12 = vsyncpa [#allocation5], 0  ;;  %s21_s20 = sshll.u32 %s671_s2, 4  ;;  %s566_s21 = smov [#allocation3]   ;;  %s22_s20 = int_to_ptr.hbm [resolvable:$true] %s21_s20 }
   0x3   :  { %s23_s22 = sshll.u32 %s566_s21, 4  ;;  %s34_s25 = sshll.u32 %s672_s3, 4  ;;  %s24_s22 = int_to_ptr.vmem [resolvable:$true] %s23_s22  ;;  %s35_s25 = int_to_ptr.hbm [resolvable:$true] %s34_s25 }
   0x4   :  { %s567_s26 = smov 128   ;;  %s568_s27 = smov 8  }
   0x5   :  { %29 = dma.hbm_to_vmem [thread:$0]  %s22_s20, 512, %s24_s22, [#allocation4], %s567_s26, %s567_s26, %s568_s27  }
   0x6   :  { %s569_s28 = smov [#allocation6]  }
   0x7   :  { %s36_s29 = sshll.u32 %s569_s28, 4  ;;  %s37_s29 = int_to_ptr.vmem [resolvable:$true] %s36_s29 }
   0x8   :  { %42 = dma.hbm_to_vmem [thread:$0]  %s35_s25, 512, %s37_s29, [#allocation7], %s567_s26, %s567_s26, %s568_s27  }
   0x9   :  { %560 = dma.done.wait [#allocation4], 512  }
   0xa   :  { %561 = vsyncadd [#allocation4], 4294966784 }
   0xb   :  { %562 = dma.done.wait [#allocation7], 512  }
   0xc   :  { %563 = vsyncadd [#allocation7], 4294966784  ;;  %v570_v0 = vmov 0   ;;  %v53_v1 = vld [vmem:[%s669_s0] sm:$0xff]  ;;  %v70_v2 = vld [vmem:[%s670_s1 + $0x8] sm:$0xff]  ;;  %v55_v8 = vlaneseq  ;;  %vm71_vm0 = vcmask 130048  }
   0xd   :  { %453 = vset.pattern.permute.xlu0 %v570_v0  ;;  %454 = vset.pattern.permute.xlu2 %v570_v0  ;;  %v69_v3 = vld [vmem:[%s670_s1] sm:$0xff]  ;;  %v104_v4 = vld [vmem:[#allocation3 + $0x18] sm:$0xff]  ;;  %v102_v7 = vld [vmem:[#allocation3 + $0x8] sm:$0xff]  ;;  %v571_v11 = vmov 0.0   ;;  %vm109_vm2 = vcmask 261120   ;;  %s572_s10 = smov 64  }
   0xe   :  { %58 = vperm.xlu0 %453, %v53_v1   ;;  %92 = vmatpush.msra.mxu0 %v70_v2  ;;  %v103_v5 = vld [vmem:[#allocation3 + $0x10] sm:$0xff]  ;;  %v144_v6 = vld [vmem:[#allocation6 + $0x18] sm:$0xff]  ;;  %v621_v9 = vand.u32 127, %v55_v8  ;;  %v101_v13 = vld [vmem:[#allocation3] sm:$0xff]  ;;  %s575_s13 = smov [#allocation8]   ;;  %s419_s17 = sshll.u32 %s674_s5, 4  ;;  %s420_s17 = int_to_ptr.hbm [resolvable:$true] %s419_s17 }
   0xf   :  { %128 = vmatpush.msra.mxu1 %v104_v4  ;;  %161 = vmatpush.msra.mxu2 %v144_v6  ;;  %v143_v14 = vld [vmem:[#allocation6 + $0x10] sm:$0xff]  ;;  %v142_v15 = vld [vmem:[#allocation6 + $0x8] sm:$0xff]  ;;  %v141_v16 = vld [vmem:[#allocation6] sm:$0xff]  ;;  %s417_s14 = sshll.u32 %s575_s13, 4  ;;  %s418_s14 = int_to_ptr.vmem [resolvable:$true] %s417_s14 }
  0x10   :  { %93 = vmatpush.msra.mxu0 %v69_v3  ;;  %225 = vmatpush.msra.mxu3 %v144_v6  ;;  %v631_v18 = vld [vmem:[%s673_s4] ss:$0 sm:$0xff]  ;;  %s573_s4 = smov 32   ;;  %v54_v54 = vld [vmem:[%s669_s0 + $0x8] sm:$0xff]  ;;  %s574_s0 = smov 96  }
  0x11   :  { %129 = vmatpush.msra.mxu1 %v103_v5  ;;  %162 = vmatpush.msra.mxu2 %v143_v14 }
  0x12   :  { %226 = vmatpush.msra.mxu3 %v143_v14 }
  0x13   :  { %130 = vmatpush.msra.mxu1 %v102_v7  ;;  %163 = vmatpush.msra.mxu2 %v142_v15 }
  0x14   :  { %227 = vmatpush.msra.mxu3 %v142_v15 }
  0x15   :  { %131 = vmatpush.msra.mxu1 %v101_v13  ;;  %164 = vmatpush.msra.mxu2 %v141_v16 }
  0x16   :  { %165 = vmatmul.f32.vlgmr.msra.gmra.mxu2 %v571_v11  ;;  %228 = vmatpush.msra.mxu3 %v141_v16 }
  0x17   :  { %289 = vmatpush.msrb.mxu2 %v144_v6 }
  0x18   :  { %353 = vmatpush.msrb.mxu3 %v144_v6 }
  0x19   :  { %290 = vmatpush.msrb.mxu2 %v143_v14 }
  0x1a   :  { %354 = vmatpush.msrb.mxu3 %v143_v14 }
  0x1b   :  { %291 = vmatpush.msrb.mxu2 %v142_v15 }
  0x1c   :  { %355 = vmatpush.msrb.mxu3 %v142_v15 }
  0x1d   :  { %292 = vmatpush.msrb.mxu2 %v141_v16 }
  0x1e   :  { %356 = vmatpush.msrb.mxu3 %v141_v16 }
  0x80   :  { %v59_v10 = vpop.permute.xlu0 %58 }
  0x81   :  { %vm63_vm1 = vcmp.eq.s32.totalorder %v621_v9, %v59_v10 }
  0x82   :  { %v430_v12 = vsel %vm63_vm1, 1.0, %v571_v11 }
  0x83   :  { %432 = vmatmul.msk.f32.vlgmr.msra.gmra.mxu0 %vm71_vm0, %v430_v12 }
  0x99   :  { %v166_v21 = vpop.f32.mrf.mxu2 }
 0x100   :  { %v95_v17 = vpop.f32.mrf.mxu0 }
 0x101   :  { %434 = vmatmul.msk.f32.vlgmr.msra.gmra.mxu1 %vm109_vm2, %v95_v17 }
 0x17e   :  { %v133_v19 = vpop.f32.mrf.mxu1 }
 0x17f   :  { %v134_v20 = vadd.f32 %v631_v18, %v133_v19 }
 0x181   :  { %139 = vst [vmem:[#allocation2] sm:$0xff] %v134_v20 }
 0x188   :  { %v145_v22 = vld [vmem:[#allocation2] sm:$0xf]  ;;  %v207_v47 = vld [vmem:[#allocation2 + $0x4] sm:$0xf] }
 0x189   :  { %v169_v23 = vadd.f32 %v166_v21, %v145_v22 }
 0x18b   :  { %456 = vtanh.f32 %v169_v23  ;;  %v436_v25 = vmul.f32 -1.442695, %v169_v23 }
 0x18d   :  { %458 = vpow2.f32 %v436_v25 }
 0x191   :  { %v457_v24 = vpop.eup %456 }
 0x192   :  { %192 = vrot.lane.b32.xlu0 %v457_v24, %s572_s10 }
 0x193   :  { %v459_v26 = vpop.eup %458 }
 0x194   :  { %v173_v27 = vadd.f32 1.0, %v459_v26 }
 0x196   :  { %460 = vrcp.f32 %v173_v27  ;;  %v185_v33 = vand.u32 2147483648, %v173_v27  ;;  %vm179_vm4 = vweird.f32 %v173_v27  ;;  %v183_v34 = vand.u32 2147483647, %v173_v27 }
 0x198   :  { %v186_v36 = vor.u32 1.1754944e-38, %v185_v33  ;;  %vm184_vm6 = vcmp.eq.f32.partialorder %v183_v34, 8.507059e+37 }
 0x19c   :  { %v461_v28 = vpop.eup %460 }
 0x19d   :  { %v175_v29 = vmul.f32 %v461_v28, %v173_v27  ;;  %vm180_vm3 = vweird.f32 %v461_v28 }
 0x19e   :  { %vm181_vm5 = vmor %vm179_vm4, %vm180_vm3 }
 0x19f   :  { %v176_v30 = vsub.f32 1.0, %v175_v29 }
 0x1a1   :  { %v177_v31 = vmul.f32 %v461_v28, %v176_v30 }
 0x1a3   :  { %v178_v32 = vadd.f32 %v461_v28, %v177_v31 }
 0x1a5   :  { %v182_v35 = vsel %vm181_vm5, %v461_v28, %v178_v32  ;;  %vm407_vm5 = vcmask 523264  }
 0x1a6   :  { %v187_v38 = vsel %vm184_vm6, %v186_v36, %v182_v35  ;;  %vm409_vm6 = vcmask 785408  }
 0x1a7   :  { %v190_v40 = vmul.f32 0.0, %v187_v38 }
 0x204   :  { %v193_v37 = vpop.permute.xlu0 %192 }
 0x205   :  { %v195_v39 = vmul.f32 %v193_v37, %v187_v38 }
 0x207   :  { %197 = vrot.lane.b32.xlu1 %v195_v39, %s573_s4 }
 0x279   :  { %v198_v41 = vpop.permute.xlu1 %197 }
 0x27a   :  { %v200_v42 = vadd.f32 %v198_v41, %v190_v40 }
 0x27c   :  { %462 = vtanh.f32 %v200_v42 }
 0x282   :  { %v463_v43 = vpop.eup %462 }
 0x283   :  { %203 = vrot.lane.b32.xlu1 %v463_v43, %s572_s10 }
 0x2f5   :  { %v204_v44 = vpop.permute.xlu1 %203 }
 0x2f6   :  { %v206_v45 = vmul.f32 %v204_v44, %v187_v38 }
 0x2f8   :  { %209 = vrot.lane.b32.xlu2 %v206_v45, %s573_s4 }
 0x300   :  { %61 = vperm.xlu2 %454, %v54_v54  }
 0x352   :  { %v638_v46 = vpop.permute.xlu2 %209 }
 0x353   :  { %437 = vmatmul.msk.f32.vlgmr.msra.gmra.mxu3 %vm109_vm2, %v638_v46 }
 0x35a   :  { %v62_v3 = vpop.permute.xlu2 %61 }
 0x35b   :  { %vm64_vm11 = vcmp.eq.s32.totalorder %v621_v9, %v62_v3 }
 0x35c   :  { %v431_v4 = vsel %vm64_vm11, 1.0, %v571_v11 }
 0x35d   :  { %433 = vmatmul.msk.f32.gmra.mxu0 %vm71_vm0, %v431_v4 }
 0x3d6   :  { %v230_v48 = vpop.f32.mrf.mxu3 }
 0x3d7   :  { %v233_v49 = vadd.f32 %v230_v48, %v207_v47 }
 0x3d9   :  { %464 = vtanh.f32 %v233_v49  ;;  %v438_v51 = vmul.f32 -1.442695, %v233_v49 }
 0x3da   :  { %v98_v13 = vpop.f32.mrf.mxu0 }
 0x3db   :  { %466 = vpow2.f32 %v438_v51  ;;  %435 = vmatmul.msk.f32.gmra.mxu1 %vm109_vm2, %v98_v13 }
 0x3df   :  { %v465_v50 = vpop.eup %464 }
 0x3e0   :  { %256 = vrot.lane.b32.xlu0 %v465_v50, %s572_s10 }
 0x3e1   :  { %v467_v52 = vpop.eup %466 }
 0x3e2   :  { %v237_v53 = vadd.f32 1.0, %v467_v52 }
 0x3e4   :  { %468 = vrcp.f32 %v237_v53  ;;  %v249_v60 = vand.u32 2147483648, %v237_v53  ;;  %vm243_vm8 = vweird.f32 %v237_v53  ;;  %v247_v61 = vand.u32 2147483647, %v237_v53 }
 0x3e6   :  { %v250_v63 = vor.u32 1.1754944e-38, %v249_v60  ;;  %vm248_vm10 = vcmp.eq.f32.partialorder %v247_v61, 8.507059e+37 }
 0x3ea   :  { %v469_v55 = vpop.eup %468 }
 0x3eb   :  { %v239_v56 = vmul.f32 %v469_v55, %v237_v53  ;;  %vm244_vm7 = vweird.f32 %v469_v55 }
 0x3ec   :  { %vm245_vm9 = vmor %vm243_vm8, %vm244_vm7 }
 0x3ed   :  { %v240_v57 = vsub.f32 1.0, %v239_v56 }
 0x3ef   :  { %v241_v58 = vmul.f32 %v469_v55, %v240_v57 }
 0x3f1   :  { %v242_v59 = vadd.f32 %v469_v55, %v241_v58 }
 0x3f3   :  { %v246_v62 = vsel %vm245_vm9, %v469_v55, %v242_v59 }
 0x3f4   :  { %v251_v1 = vsel %vm248_vm10, %v250_v63, %v246_v62 }
 0x3f5   :  { %v254_v5 = vmul.f32 %v251_v1, %v200_v42 }
 0x452   :  { %v257_v0 = vpop.permute.xlu0 %256 }
 0x453   :  { %v259_v2 = vmul.f32 %v257_v0, %v251_v1 }
 0x455   :  { %261 = vrot.lane.b32.xlu1 %v259_v2, %s573_s4 }
 0x458   :  { %v136_v9 = vpop.f32.mrf.mxu1 }
 0x459   :  { %v137_v11 = vadd.f32 %v631_v18, %v136_v9 }
 0x45b   :  { %140 = vst [vmem:[#allocation2 + $0x8] sm:$0xff] %v137_v11 }
 0x462   :  { %v271_v15 = vld [vmem:[#allocation2 + $0x8] sm:$0xf]  ;;  %v335_v41 = vld [vmem:[#allocation2 + $0xc] sm:$0xf] }
 0x4c7   :  { %v262_v6 = vpop.permute.xlu1 %261 }
 0x4c8   :  { %v264_v7 = vadd.f32 %v262_v6, %v254_v5 }
 0x4ca   :  { %470 = vtanh.f32 %v264_v7 }
 0x4d0   :  { %v471_v8 = vpop.eup %470 }
 0x4d1   :  { %267 = vrot.lane.b32.xlu2 %v471_v8, %s572_s10 }
 0x52b   :  { %v268_v10 = vpop.permute.xlu2 %267 }
 0x52c   :  { %v270_v12 = vmul.f32 %v268_v10, %v251_v1 }
 0x52e   :  { %273 = vrot.lane.b32.xlu0 %v270_v12, %s573_s4 }
 0x5a0   :  { %v274_v14 = vpop.permute.xlu0 %273 }
 0x5a1   :  { %439 = vmatmul.msk.f32.vlgmr.msrb.gmra.mxu2 %vm109_vm2, %v274_v14 }
 0x624   :  { %v294_v16 = vpop.f32.mrf.mxu2 }
 0x625   :  { %v297_v17 = vadd.f32 %v294_v16, %v271_v15 }
 0x627   :  { %472 = vtanh.f32 %v297_v17  ;;  %v440_v20 = vmul.f32 -1.442695, %v297_v17 }
 0x629   :  { %474 = vpow2.f32 %v440_v20 }
 0x62d   :  { %v473_v19 = vpop.eup %472 }
 0x62e   :  { %320 = vrot.lane.b32.xlu1 %v473_v19, %s572_s10 }
 0x62f   :  { %v475_v21 = vpop.eup %474 }
 0x630   :  { %v301_v22 = vadd.f32 1.0, %v475_v21 }
 0x632   :  { %476 = vrcp.f32 %v301_v22  ;;  %v313_v18 = vand.u32 2147483648, %v301_v22  ;;  %vm307_vm13 = vweird.f32 %v301_v22  ;;  %v311_v28 = vand.u32 2147483647, %v301_v22 }
 0x634   :  { %v314_v30 = vor.u32 1.1754944e-38, %v313_v18  ;;  %vm312_vm15 = vcmp.eq.f32.partialorder %v311_v28, 8.507059e+37 }
 0x638   :  { %v477_v23 = vpop.eup %476 }
 0x639   :  { %v303_v24 = vmul.f32 %v477_v23, %v301_v22  ;;  %vm308_vm12 = vweird.f32 %v477_v23 }
 0x63a   :  { %vm309_vm14 = vmor %vm307_vm13, %vm308_vm12 }
 0x63b   :  { %v304_v25 = vsub.f32 1.0, %v303_v24 }
 0x63d   :  { %v305_v26 = vmul.f32 %v477_v23, %v304_v25 }
 0x63f   :  { %v306_v27 = vadd.f32 %v477_v23, %v305_v26 }
 0x641   :  { %v310_v29 = vsel %vm309_vm14, %v477_v23, %v306_v27 }
 0x642   :  { %v315_v32 = vsel %vm312_vm15, %v314_v30, %v310_v29 }
 0x643   :  { %v318_v34 = vmul.f32 %v315_v32, %v264_v7 }
 0x6a0   :  { %v321_v31 = vpop.permute.xlu1 %320 }
 0x6a1   :  { %v323_v33 = vmul.f32 %v321_v31, %v315_v32 }
 0x6a3   :  { %325 = vrot.lane.b32.xlu2 %v323_v33, %s573_s4 }
 0x6fd   :  { %v326_v35 = vpop.permute.xlu2 %325 }
 0x6fe   :  { %v328_v36 = vadd.f32 %v326_v35, %v318_v34 }
 0x700   :  { %478 = vtanh.f32 %v328_v36 }
 0x706   :  { %v479_v37 = vpop.eup %478 }
 0x707   :  { %331 = vrot.lane.b32.xlu0 %v479_v37, %s572_s10 }
 0x779   :  { %v332_v38 = vpop.permute.xlu0 %331 }
 0x77a   :  { %v334_v39 = vmul.f32 %v332_v38, %v315_v32 }
 0x77c   :  { %337 = vrot.lane.b32.xlu1 %v334_v39, %s573_s4 }
 0x7ee   :  { %v338_v40 = vpop.permute.xlu1 %337 }
 0x7ef   :  { %441 = vmatmul.msk.f32.vlgmr.msrb.gmra.mxu3 %vm109_vm2, %v338_v40 }
 0x872   :  { %v358_v42 = vpop.f32.mrf.mxu3 }
 0x873   :  { %v361_v43 = vadd.f32 %v358_v42, %v335_v41 }
 0x875   :  { %480 = vtanh.f32 %v361_v43  ;;  %v442_v45 = vmul.f32 -1.442695, %v361_v43 }
 0x877   :  { %482 = vpow2.f32 %v442_v45 }
 0x87b   :  { %v481_v44 = vpop.eup %480 }
 0x87c   :  { %384 = vrot.lane.b32.xlu2 %v481_v44, %s572_s10 }
 0x87d   :  { %v483_v47 = vpop.eup %482 }
 0x87e   :  { %v365_v48 = vadd.f32 1.0, %v483_v47 }
 0x880   :  { %484 = vrcp.f32 %v365_v48  ;;  %v377_v54 = vand.u32 2147483648, %v365_v48  ;;  %vm371_vm1 = vweird.f32 %v365_v48  ;;  %v375_v55 = vand.u32 2147483647, %v365_v48 }
 0x882   :  { %v378_v57 = vor.u32 1.1754944e-38, %v377_v54  ;;  %vm376_vm4 = vcmp.eq.f32.partialorder %v375_v55, 8.507059e+37 }
 0x884   :  { %400 = vrot.lane.b32.xlu2 %v270_v12, %s572_s10 }
 0x886   :  { %v485_v49 = vpop.eup %484 }
 0x887   :  { %v367_v50 = vmul.f32 %v485_v49, %v365_v48  ;;  %vm372_vm0 = vweird.f32 %v485_v49 }
 0x888   :  { %vm373_vm3 = vmor %vm371_vm1, %vm372_vm0 }
 0x889   :  { %v368_v51 = vsub.f32 1.0, %v367_v50 }
 0x88b   :  { %v369_v52 = vmul.f32 %v485_v49, %v368_v51 }
 0x88d   :  { %v370_v53 = vadd.f32 %v485_v49, %v369_v52 }
 0x88f   :  { %v374_v56 = vsel %vm373_vm3, %v485_v49, %v370_v53 }
 0x890   :  { %v379_v59 = vsel %vm376_vm4, %v378_v57, %v374_v56 }
 0x891   :  { %v382_v61 = vmul.f32 %v379_v59, %v328_v36 }
 0x8d6   :  { %v385_v58 = vpop.permute.xlu2 %384 }
 0x8d7   :  { %v387_v60 = vmul.f32 %v385_v58, %v379_v59 }
 0x8d9   :  { %389 = vrot.lane.b32.xlu0 %v387_v60, %s573_s4 }
 0x8de   :  { %v401_v1 = vpop.permute.xlu2 %400 }
 0x8df   :  { %v406_v4 = vsel %vm109_vm2, %v638_v46, %v401_v1 }
 0x8e1   :  { %403 = vrot.lane.b32.xlu0 %v334_v39, %s574_s0 }
 0x94b   :  { %v390_v62 = vpop.permute.xlu0 %389 }
 0x94c   :  { %v392_v63 = vadd.f32 %v390_v62, %v382_v61 }
 0x94e   :  { %486 = vtanh.f32 %v392_v63 }
 0x953   :  { %v404_v2 = vpop.permute.xlu0 %403 }
 0x954   :  { %v487_v0 = vpop.eup %486  ;;  %v408_v6 = vsel %vm407_vm5, %v406_v4, %v404_v2 }
 0x955   :  { %395 = vrot.lane.b32.xlu1 %v487_v0, %s572_s10 }
 0x9c7   :  { %v396_v3 = vpop.permute.xlu1 %395 }
 0x9c8   :  { %v398_v5 = vmul.f32 %v396_v3, %v379_v59 }
 0x9ca   :  { %v410_v7 = vsel %vm409_vm6, %v408_v6, %v398_v5 }
 0x9cb   :  { %411 = vst [vmem:[#allocation8] sm:$0xf] %v410_v7 }
 0x9cc   :  { %422 = dma.vmem_to_hbm [thread:$0]  %s418_s14, 64, %s420_s17, [#allocation5]  }
 0x9cd   :  { %564 = dma.done.wait [#allocation5], 64  }
 0x9ce   :  { %565 = vsyncadd [#allocation5], 4294967232 }
 0x9cf   :  { %427 = vsyncpa [#allocation4], 1 }
 0x9d0   :  { %428 = vsyncpa [#allocation7], 1 }
 0x9d1   :  { %429 = vsyncpa [#allocation5], 1 }

</bundles_post_ra>
